<compile_context>
chip_gen: v5e
topology: v5e:2x2
jax: 0.10.0
libtpu: 0.0.40
codegen_flags: <defaults>
</compile_context>

<pallas_src>
import functools

import jax
import jax.numpy as jnp
from jax import lax
from jax.experimental import pallas as pl
from jax.experimental.pallas import tpu as pltpu


def _backbone_update_kernel(s_ref, w_ref, b_ref, out_ref):
    # s_ref  : (TM, c_s)  input-feature tile
    # w_ref  : (6, c_s)   Linear weight (constant index_map -> resident)
    # b_ref  : (6,)       Linear bias in SMEM (scalar adds)
    # out_ref: (16, TM)   transposed, lane-dense flattened 4x4 transforms

    # g[k, r] = sum_c W[k, c] * s[r, c]  -> (6, TM) f32 accumulate on the MXU.
    g = lax.dot_general(
        w_ref[...],
        s_ref[...],
        dimension_numbers=(((1,), (1,)), ((), ())),
        preferred_element_type=jnp.float32,
    )

    bx = g[0:1, :] + b_ref[0]
    by = g[1:2, :] + b_ref[1]
    bz = g[2:3, :] + b_ref[2]
    tx = g[3:4, :] + b_ref[3]
    ty = g[4:5, :] + b_ref[4]
    tz = g[5:6, :] + b_ref[5]

    xx = bx * bx
    yy = by * by
    zz = bz * bz
    xy = bx * by
    xz = bx * bz
    yz = by * bz

    # q = (1, bx, by, bz) / sqrt(1 + |b|^2)  =>  every R term scales by
    # 1/(1 + |b|^2); exact reciprocal keeps bit-level tolerance tight.
    inv_n2 = pl.reciprocal(1.0 + xx + yy + zz, approx=False)
    c = 2.0 * inv_n2

    dt = out_ref.dtype
    tm = bx.shape[1]

    # Row-major flattened 4x4:
    #   [r00 r01 r02 tx | r10 r11 r12 ty | r20 r21 r22 tz | 0 0 0 1]
    out_ref[0:1, :] = (1.0 - c * (yy + zz)).astype(dt)    # r00
    out_ref[1:2, :] = (c * (xy - bz)).astype(dt)          # r01
    out_ref[2:3, :] = (c * (xz + by)).astype(dt)          # r02
    out_ref[3:4, :] = tx.astype(dt)
    out_ref[4:5, :] = (c * (xy + bz)).astype(dt)          # r10
    out_ref[5:6, :] = (1.0 - c * (xx + zz)).astype(dt)    # r11
    out_ref[6:7, :] = (c * (yz - bx)).astype(dt)          # r12
    out_ref[7:8, :] = ty.astype(dt)
    out_ref[8:9, :] = (c * (xz - by)).astype(dt)          # r20
    out_ref[9:10, :] = (c * (yz + bx)).astype(dt)         # r21
    out_ref[10:11, :] = (1.0 - c * (xx + yy)).astype(dt)  # r22
    out_ref[11:12, :] = tz.astype(dt)

    # Constant bottom row [0, 0, 0, 1] for every transform: one (4, TM) store.
    row = lax.broadcasted_iota(jnp.int32, (4, tm), 0)
    out_ref[12:16, :] = jnp.where(row == 3, 1.0, 0.0).astype(dt)


@functools.partial(jax.jit, static_argnames=("tm",))
def backbone_update(s, weight, bias, *, tm=1024):
    """s: [..., c_s]; weight: [6, c_s]; bias: [6]  ->  T: [..., 4, 4]."""
    orig_shape = s.shape
    c_s = orig_shape[-1]
    s2 = s.reshape(-1, c_s)            # keep native dtype: no upcast copy
    n = s2.shape[0]

    # Row tile: large enough to amortize per-step overhead, small enough that
    # the double-buffered input tile stays well inside the default scoped VMEM
    # on all generations (v5e: 16 MiB, v6e/v7x: 32 MiB).
    row_bytes = c_s * s2.dtype.itemsize
    tm_cap = max(128, ((8 * 1024 * 1024) // (2 * row_bytes)) // 128 * 128)
    tm = min(tm, tm_cap)
    if n <= tm:
        tm = n                          # single full-extent block, no masking

    w = weight.astype(s2.dtype)                  # (6, c_s) resident in VMEM
    b = bias.astype(jnp.float32).reshape(6)      # (6,) SMEM scalars

    out_t = pl.pallas_call(
        _backbone_update_kernel,
        out_shape=jax.ShapeDtypeStruct((16, n), s2.dtype),
        grid_spec=pltpu.PrefetchScalarGridSpec(
            num_scalar_prefetch=0,
            grid=(pl.cdiv(n, tm),),
            in_specs=[
                pl.BlockSpec((tm, c_s), lambda i: (i, 0)),
                pl.BlockSpec((6, c_s), lambda i: (0, 0)),
                pl.BlockSpec(memory_space=pltpu.MemorySpace.SMEM),
            ],
            out_specs=pl.BlockSpec((16, tm), lambda i: (0, i)),
        ),
        compiler_params=pltpu.CompilerParams(
            dimension_semantics=("parallel",),
        ),
    )(s2, w, b)

    # (16, N) -> (N, 16) -> [..., 4, 4]   (layout plumbing outside the kernel)
    return out_t.T.reshape(orig_shape[:-1] + (4, 4))


def _reference(s, weight, bias):
    """Pure-JAX reference matching the PyTorch module semantics."""
    group = jnp.einsum("...c,oc->...o", s, weight) + bias
    ones = jnp.ones(group.shape[:-1] + (1,), dtype=group.dtype)
    quat = jnp.concatenate([ones, group[..., :3]], axis=-1)
    quat = quat / jnp.linalg.norm(quat, axis=-1, keepdims=True)
    t = group[..., 3:]
    w, x, y, z = quat[..., 0], quat[..., 1], quat[..., 2], quat[..., 3]
    R = jnp.stack(
        [
            jnp.stack([1 - 2 * (y * y + z * z), 2 * (x * y - w * z), 2 * (x * z + w * y)], -1),
            jnp.stack([2 * (x * y + w * z), 1 - 2 * (x * x + z * z), 2 * (y * z - w * x)], -1),
            jnp.stack([2 * (x * z - w * y), 2 * (y * z + w * x), 1 - 2 * (x * x + y * y)], -1),
        ],
        axis=-2,
    )
    top = jnp.concatenate([R, t[..., None]], axis=-1)                    # [..., 3, 4]
    bottom = jnp.zeros(top.shape[:-2] + (1, 4), top.dtype).at[..., 0, 3].set(1.0)
    return jnp.concatenate([top, bottom], axis=-2)                       # [..., 4, 4]


if __name__ == "__main__":
    key = jax.random.PRNGKey(0)
    k_s, k_w, k_b, k_s2 = jax.random.split(key, 4)

    # Small shapes consistent with the module: batch=2, seq=8, c_s=32.
    batch, seq, c_s = 2, 8, 32
    s = jax.random.normal(k_s, (batch, seq, c_s), dtype=jnp.float32)

    # Deterministic synthetic nn.Linear(c_s, 6) parameters.
    bound = 1.0 / (c_s ** 0.5)
    weight = jax.random.uniform(k_w, (6, c_s), minval=-bound, maxval=bound, dtype=jnp.float32)
    bias = jax.random.uniform(k_b, (6,), minval=-bound, maxval=bound, dtype=jnp.float32)

    out = jax.block_until_ready(backbone_update(s, weight, bias))
    ref = _reference(s, weight, bias)
    assert out.shape == (batch, seq, 4, 4), out.shape
    assert jnp.allclose(out, ref, atol=1e-5, rtol=1e-5), float(jnp.max(jnp.abs(out - ref)))

    # Also exercise the large-tile / ragged-final-block path (N > TM).
    n2, c2 = 1500, 64
    s_big = jax.random.normal(k_s2, (n2, c2), dtype=jnp.float32)
    bound2 = 1.0 / (c2 ** 0.5)
    w2 = jax.random.uniform(k_w, (6, c2), minval=-bound2, maxval=bound2, dtype=jnp.float32)
    b2 = jax.random.uniform(k_b, (6,), minval=-bound2, maxval=bound2, dtype=jnp.float32)
    out2 = jax.block_until_ready(backbone_update(s_big, w2, b2))
    ref2 = _reference(s_big, w2, b2)
    assert out2.shape == (n2, 4, 4), out2.shape
    assert jnp.allclose(out2, ref2, atol=1e-5, rtol=1e-5), float(jnp.max(jnp.abs(out2 - ref2)))

    print("KERNEL_OK")
</pallas_src>

<mosaic_0001>
module attributes {stable_mosaic.version = 11 : i64} {
  func.func @_backbone_update_kernel(%arg0: i32, %arg1: memref<16x32xf32, #tpu.memory_space<vmem>>, %arg2: memref<6x32xf32, #tpu.memory_space<vmem>>, %arg3: memref<6xf32, #tpu.memory_space<smem>>, %arg4: memref<16x16xf32, #tpu.memory_space<vmem>>) attributes {dimension_semantics = [#tpu.dimension_semantics<parallel>], iteration_bounds = array<i64: 1>, scalar_prefetch = 0 : i64, scratch_operands = 0 : i64, tpu.core_type = #tpu.core_type<tc>, window_params = [{transform_indices = @transform_0, window_bounds = array<i64: 16, 32>}, {pipeline_mode = #tpu.pipeline_mode<synchronous>, transform_indices = @transform_1, window_bounds = array<i64: 6, 32>}, {transform_indices = @transform_2, window_bounds = array<i64: 6>}, {transform_indices = @transform_3, window_bounds = array<i64: 16, 16>}]} {
    %c0 = arith.constant 0 : index
    %c0_0 = arith.constant 0 : index
    %0 = vector.load %arg2[%c0, %c0_0] : memref<6x32xf32, #tpu.memory_space<vmem>>, vector<6x32xf32>
    %c0_1 = arith.constant 0 : index
    %c0_2 = arith.constant 0 : index
    %1 = vector.load %arg1[%c0_1, %c0_2] : memref<16x32xf32, #tpu.memory_space<vmem>>, vector<16x32xf32>
    %cst = arith.constant dense<0.000000e+00> : vector<6x16xf32>
    %2 = tpu.matmul %0, %1, %cst {dimension_numbers = #tpu.dot_dimension_numbers<[1], [1], [0], [0], [0, 0, 1, 0], [], []>} : vector<6x32xf32>, vector<16x32xf32>, vector<6x16xf32> -> vector<6x16xf32>
    %3 = vector.extract_strided_slice %2 {offsets = [0, 0], sizes = [1, 16], strides = [1, 1]} : vector<6x16xf32> to vector<1x16xf32>
    %c0_3 = arith.constant 0 : index
    %4 = memref.load %arg3[%c0_3] : memref<6xf32, #tpu.memory_space<smem>>
    %5 = vector.broadcast %4 : f32 to vector<1x16xf32>
    %6 = arith.addf %3, %5 : vector<1x16xf32>
    %7 = vector.extract_strided_slice %2 {offsets = [1, 0], sizes = [1, 16], strides = [1, 1]} : vector<6x16xf32> to vector<1x16xf32>
    %c1 = arith.constant 1 : index
    %8 = memref.load %arg3[%c1] : memref<6xf32, #tpu.memory_space<smem>>
    %9 = vector.broadcast %8 : f32 to vector<1x16xf32>
    %10 = arith.addf %7, %9 : vector<1x16xf32>
    %11 = vector.extract_strided_slice %2 {offsets = [2, 0], sizes = [1, 16], strides = [1, 1]} : vector<6x16xf32> to vector<1x16xf32>
    %c2 = arith.constant 2 : index
    %12 = memref.load %arg3[%c2] : memref<6xf32, #tpu.memory_space<smem>>
    %13 = vector.broadcast %12 : f32 to vector<1x16xf32>
    %14 = arith.addf %11, %13 : vector<1x16xf32>
    %15 = vector.extract_strided_slice %2 {offsets = [3, 0], sizes = [1, 16], strides = [1, 1]} : vector<6x16xf32> to vector<1x16xf32>
    %c3 = arith.constant 3 : index
    %16 = memref.load %arg3[%c3] : memref<6xf32, #tpu.memory_space<smem>>
    %17 = vector.broadcast %16 : f32 to vector<1x16xf32>
    %18 = arith.addf %15, %17 : vector<1x16xf32>
    %19 = vector.extract_strided_slice %2 {offsets = [4, 0], sizes = [1, 16], strides = [1, 1]} : vector<6x16xf32> to vector<1x16xf32>
    %c4 = arith.constant 4 : index
    %20 = memref.load %arg3[%c4] : memref<6xf32, #tpu.memory_space<smem>>
    %21 = vector.broadcast %20 : f32 to vector<1x16xf32>
    %22 = arith.addf %19, %21 : vector<1x16xf32>
    %23 = vector.extract_strided_slice %2 {offsets = [5, 0], sizes = [1, 16], strides = [1, 1]} : vector<6x16xf32> to vector<1x16xf32>
    %c5 = arith.constant 5 : index
    %24 = memref.load %arg3[%c5] : memref<6xf32, #tpu.memory_space<smem>>
    %25 = vector.broadcast %24 : f32 to vector<1x16xf32>
    %26 = arith.addf %23, %25 : vector<1x16xf32>
    %27 = arith.mulf %6, %6 : vector<1x16xf32>
    %28 = arith.mulf %10, %10 : vector<1x16xf32>
    %29 = arith.mulf %14, %14 : vector<1x16xf32>
    %30 = arith.mulf %6, %10 : vector<1x16xf32>
    %31 = arith.mulf %6, %14 : vector<1x16xf32>
    %32 = arith.mulf %10, %14 : vector<1x16xf32>
    %cst_4 = arith.constant 1.000000e+00 : f32
    %33 = vector.broadcast %cst_4 : f32 to vector<1x16xf32>
    %34 = arith.addf %33, %27 : vector<1x16xf32>
    %35 = arith.addf %34, %28 : vector<1x16xf32>
    %36 = arith.addf %35, %29 : vector<1x16xf32>
    %37 = tpu.reciprocal %36 : vector<1x16xf32> -> vector<1x16xf32>
    %cst_5 = arith.constant 2.000000e+00 : f32
    %38 = vector.broadcast %cst_5 : f32 to vector<1x16xf32>
    %39 = arith.mulf %38, %37 : vector<1x16xf32>
    %40 = arith.addf %28, %29 : vector<1x16xf32>
    %41 = arith.mulf %39, %40 : vector<1x16xf32>
    %cst_6 = arith.constant 1.000000e+00 : f32
    %42 = vector.broadcast %cst_6 : f32 to vector<1x16xf32>
    %43 = arith.subf %42, %41 : vector<1x16xf32>
    %c0_7 = arith.constant 0 : index
    %c0_8 = arith.constant 0 : index
    %44 = vector.load %arg4[%c0_7, %c0_8] : memref<16x16xf32, #tpu.memory_space<vmem>>, vector<1x16xf32>
    tpu.vector_store %arg4[%c0_7, %c0_8], %43 {strides = array<i32>} : memref<16x16xf32, #tpu.memory_space<vmem>>, vector<1x16xf32>,
    %45 = arith.subf %30, %14 : vector<1x16xf32>
    %46 = arith.mulf %39, %45 : vector<1x16xf32>
    %c1_9 = arith.constant 1 : index
    %c0_10 = arith.constant 0 : index
    %47 = vector.load %arg4[%c1_9, %c0_10] : memref<16x16xf32, #tpu.memory_space<vmem>>, vector<1x16xf32>
    tpu.vector_store %arg4[%c1_9, %c0_10], %46 {strides = array<i32>} : memref<16x16xf32, #tpu.memory_space<vmem>>, vector<1x16xf32>,
    %48 = arith.addf %31, %10 : vector<1x16xf32>
    %49 = arith.mulf %39, %48 : vector<1x16xf32>
    %c2_11 = arith.constant 2 : index
    %c0_12 = arith.constant 0 : index
    %50 = vector.load %arg4[%c2_11, %c0_12] : memref<16x16xf32, #tpu.memory_space<vmem>>, vector<1x16xf32>
    tpu.vector_store %arg4[%c2_11, %c0_12], %49 {strides = array<i32>} : memref<16x16xf32, #tpu.memory_space<vmem>>, vector<1x16xf32>,
    %c3_13 = arith.constant 3 : index
    %c0_14 = arith.constant 0 : index
    %51 = vector.load %arg4[%c3_13, %c0_14] : memref<16x16xf32, #tpu.memory_space<vmem>>, vector<1x16xf32>
    tpu.vector_store %arg4[%c3_13, %c0_14], %18 {strides = array<i32>} : memref<16x16xf32, #tpu.memory_space<vmem>>, vector<1x16xf32>,
    %52 = arith.addf %30, %14 : vector<1x16xf32>
    %53 = arith.mulf %39, %52 : vector<1x16xf32>
    %c4_15 = arith.constant 4 : index
    %c0_16 = arith.constant 0 : index
    %54 = vector.load %arg4[%c4_15, %c0_16] : memref<16x16xf32, #tpu.memory_space<vmem>>, vector<1x16xf32>
    tpu.vector_store %arg4[%c4_15, %c0_16], %53 {strides = array<i32>} : memref<16x16xf32, #tpu.memory_space<vmem>>, vector<1x16xf32>,
    %55 = arith.addf %27, %29 : vector<1x16xf32>
    %56 = arith.mulf %39, %55 : vector<1x16xf32>
    %cst_17 = arith.constant 1.000000e+00 : f32
    %57 = vector.broadcast %cst_17 : f32 to vector<1x16xf32>
    %58 = arith.subf %57, %56 : vector<1x16xf32>
    %c5_18 = arith.constant 5 : index
    %c0_19 = arith.constant 0 : index
    %59 = vector.load %arg4[%c5_18, %c0_19] : memref<16x16xf32, #tpu.memory_space<vmem>>, vector<1x16xf32>
    tpu.vector_store %arg4[%c5_18, %c0_19], %58 {strides = array<i32>} : memref<16x16xf32, #tpu.memory_space<vmem>>, vector<1x16xf32>,
    %60 = arith.subf %32, %6 : vector<1x16xf32>
    %61 = arith.mulf %39, %60 : vector<1x16xf32>
    %c6 = arith.constant 6 : index
    %c0_20 = arith.constant 0 : index
    %62 = vector.load %arg4[%c6, %c0_20] : memref<16x16xf32, #tpu.memory_space<vmem>>, vector<1x16xf32>
    tpu.vector_store %arg4[%c6, %c0_20], %61 {strides = array<i32>} : memref<16x16xf32, #tpu.memory_space<vmem>>, vector<1x16xf32>,
    %c7 = arith.constant 7 : index
    %c0_21 = arith.constant 0 : index
    %63 = vector.load %arg4[%c7, %c0_21] : memref<16x16xf32, #tpu.memory_space<vmem>>, vector<1x16xf32>
    tpu.vector_store %arg4[%c7, %c0_21], %22 {strides = array<i32>} : memref<16x16xf32, #tpu.memory_space<vmem>>, vector<1x16xf32>,
    %64 = arith.subf %31, %10 : vector<1x16xf32>
    %65 = arith.mulf %39, %64 : vector<1x16xf32>
    %c8 = arith.constant 8 : index
    %c0_22 = arith.constant 0 : index
    %66 = vector.load %arg4[%c8, %c0_22] : memref<16x16xf32, #tpu.memory_space<vmem>>, vector<1x16xf32>
    tpu.vector_store %arg4[%c8, %c0_22], %65 {strides = array<i32>} : memref<16x16xf32, #tpu.memory_space<vmem>>, vector<1x16xf32>,
    %67 = arith.addf %32, %6 : vector<1x16xf32>
    %68 = arith.mulf %39, %67 : vector<1x16xf32>
    %c9 = arith.constant 9 : index
    %c0_23 = arith.constant 0 : index
    %69 = vector.load %arg4[%c9, %c0_23] : memref<16x16xf32, #tpu.memory_space<vmem>>, vector<1x16xf32>
    tpu.vector_store %arg4[%c9, %c0_23], %68 {strides = array<i32>} : memref<16x16xf32, #tpu.memory_space<vmem>>, vector<1x16xf32>,
    %70 = arith.addf %27, %28 : vector<1x16xf32>
    %71 = arith.mulf %39, %70 : vector<1x16xf32>
    %cst_24 = arith.constant 1.000000e+00 : f32
    %72 = vector.broadcast %cst_24 : f32 to vector<1x16xf32>
    %73 = arith.subf %72, %71 : vector<1x16xf32>
    %c10 = arith.constant 10 : index
    %c0_25 = arith.constant 0 : index
    %74 = vector.load %arg4[%c10, %c0_25] : memref<16x16xf32, #tpu.memory_space<vmem>>, vector<1x16xf32>
    tpu.vector_store %arg4[%c10, %c0_25], %73 {strides = array<i32>} : memref<16x16xf32, #tpu.memory_space<vmem>>, vector<1x16xf32>,
    %c11 = arith.constant 11 : index
    %c0_26 = arith.constant 0 : index
    %75 = vector.load %arg4[%c11, %c0_26] : memref<16x16xf32, #tpu.memory_space<vmem>>, vector<1x16xf32>
    tpu.vector_store %arg4[%c11, %c0_26], %26 {strides = array<i32>} : memref<16x16xf32, #tpu.memory_space<vmem>>, vector<1x16xf32>,
    %76 = tpu.iota {dimensions = array<i32: 0>} : vector<4x16xi32>
    %c3_i32 = arith.constant 3 : i32
    %77 = vector.broadcast %c3_i32 : i32 to vector<4x16xi32>
    %78 = arith.cmpi eq, %76, %77 : vector<4x16xi32>
    %cst_27 = arith.constant 1.000000e+00 : f32
    %cst_28 = arith.constant 0.000000e+00 : f32
    %79 = vector.broadcast %cst_27 : f32 to vector<4x16xf32>
    %80 = vector.broadcast %cst_28 : f32 to vector<4x16xf32>
    %81 = arith.select %78, %79, %80 : vector<4x16xi1>, vector<4x16xf32>
    %c12 = arith.constant 12 : index
    %c0_29 = arith.constant 0 : index
    %82 = vector.load %arg4[%c12, %c0_29] : memref<16x16xf32, #tpu.memory_space<vmem>>, vector<4x16xf32>
    tpu.vector_store %arg4[%c12, %c0_29], %81 {strides = array<i32>} : memref<16x16xf32, #tpu.memory_space<vmem>>, vector<4x16xf32>,
    return
  }
  func.func @transform_0(%arg0: i32) -> (i32, i32) {
    %c0_i32 = arith.constant 0 : i32
    %c0_i32_0 = arith.constant 0 : i32
    return %arg0, %c0_i32 : i32, i32
  }
  func.func @transform_1(%arg0: i32) -> (i32, i32) {
    %c0_i32 = arith.constant 0 : i32
    %c0_i32_0 = arith.constant 0 : i32
    %c0_i32_1 = arith.constant 0 : i32
    return %c0_i32, %c0_i32_0 : i32, i32
  }
  func.func @transform_2(%arg0: i32) -> i32 {
    %c0_i32 = arith.constant 0 : i32
    %c0_i32_0 = arith.constant 0 : i32
    return %c0_i32 : i32
  }
  func.func @transform_3(%arg0: i32) -> (i32, i32) {
    %c0_i32 = arith.constant 0 : i32
    %c0_i32_0 = arith.constant 0 : i32
    return %c0_i32, %arg0 : i32, i32
  }
}

</mosaic_0001>

<bundles_post_ra>
// kernel: backbone_update.1
= control target key start
LH: loop header
LB: loop body
LE: loop exit
PB: predicated region body
PF: predicated region fallthrough
CT: control target
= control target key end

     0   :  { %8 = vsyncpa [#allocation3], 0  ;;  %s375_s0 = inlined_call_operand.hbm [shape: f32[16,32], index: 0, kind: input, shape index: {}]   ;;  %s376_s1 = inlined_call_operand.hbm [shape: f32[6,32], index: 1, kind: input, shape index: {}]   ;;  %s377_s2 = inlined_call_operand.vmem [shape: f32[6], index: 2, kind: input, shape index: {}]   ;;  %s378_s3 = inlined_call_operand.vmem [shape: f32[16,16], index: 3, kind: output, shape index: {}]  }
   0x1   :  { %9 = vsyncpa [#allocation6], 0  ;;  %s15_s14 = sshll.u32 %s375_s0, 4  ;;  %s16_s14 = int_to_ptr.hbm [resolvable:$true] %s15_s14 }
   0x2   :  { %10 = vsyncpa [#allocation4], 0  ;;  %s292_s15 = smov [#allocation2]   ;;  %s29_s19 = sshll.u32 %s376_s1, 4  ;;  %s30_s19 = int_to_ptr.hbm [resolvable:$true] %s29_s19 }
   0x3   :  { %s17_s16 = sshll.u32 %s292_s15, 4  ;;  %s293_s20 = smov 128   ;;  %s18_s16 = int_to_ptr.vmem [resolvable:$true] %s17_s16 }
   0x4   :  { %s294_s21 = smov 8   ;;  %s295_s22 = smov [#allocation5]  }
   0x5   :  { %23 = dma.hbm_to_vmem [thread:$0]  %s16_s14, 256, %s18_s16, [#allocation3], %s293_s20, %s293_s20, %s294_s21  }
   0x6   :  { %s31_s23 = sshll.u32 %s295_s22, 4  ;;  %s40_s26 = sshll.u32 %s377_s2, 4  ;;  %s32_s23 = int_to_ptr.vmem [resolvable:$true] %s31_s23  ;;  %s41_s26 = int_to_ptr.vmem [resolvable:$true] %s40_s26 }
   0x7   :  { %34 = dma.hbm_to_vmem [thread:$0]  %s30_s19, 128, %s32_s23, [#allocation6]  }
   0x8   :  { %s296_s0 = smov [#allocation7]  }
   0x9   :  { %43 = dma.vmem_to_smem %s41_s26, 16, %s296_s0, [#allocation4]  }
   0xa   :  { %286 = dma.done.wait [#allocation3], 256  }
   0xb   :  { %287 = vsyncadd [#allocation3], 4294967040 }
   0xc   :  { %288 = dma.done.wait [#allocation6], 128  }
   0xd   :  { %289 = vsyncadd [#allocation6], 4294967168 }
   0xe   :  { %290 = dma.done.wait [#allocation4], 16  }
   0xf   :  { %291 = vsyncadd [#allocation4], 4294967280 }
  0x10   :  { %56 = sfence }
  0x11   :  { %v59_v0 = vld [vmem:[#allocation2 + $0x8] sm:$0xff]  ;;  %vm60_vm0 = vcmask 261120   ;;  %v58_v1 = vld [vmem:[#allocation2] sm:$0xff]  ;;  %v57_v2 = vld [vmem:[#allocation5] sm:$0x3f]  ;;  %s90_s1 = sld [smem:[#allocation7]]  ;;  %v197_v19 = vlaneseq }
  0x12   :  { %210 = vmatpush.xpose.msk.msra.mxu0 %vm60_vm0, %v59_v0  ;;  %s213_s2 = sld [smem:[#allocation7 + $0x1]]  ;;  %vm162_vm1 = vcmask 125955   ;;  %vm180_vm2 = vcmask 126980   ;;  %vm195_vm3 = vcmask 128005   ;;  %vm201_vm5 = vcmask 125952  }
  0x13   :  { %s214_s27 = sld [smem:[#allocation7 + $0x2]]  ;;  %v198_v22 = vshrl.u32 %v197_v19, 7  ;;  %v297_v26 = vmov 0.0   ;;  %vm154_vm10 = vcmask 122880  }
  0x14   :  { %s215_s28 = sld [smem:[#allocation7 + $0x3]] }
  0x15   :  { %s216_s29 = sld [smem:[#allocation7 + $0x4]]  ;;  %vm199_vm4 = vcmp.eq.s32.totalorder %v198_v22, 3 }
  0x16   :  { %211 = vmatpush.xpose.msk.msra.mxu0 %vm60_vm0, %v58_v1  ;;  %s217_s30 = sld [smem:[#allocation7 + $0x5]]  ;;  %v200_v27 = vsel %vm199_vm4, 1.0, %v297_v26 }
  0x17   :  { %v91_v3 = vstv %s90_s1  ;;  %202 = vst.msk [vmem:[%s378_s3 + $0xc] sm:$0xf] %vm201_vm5, %v200_v27 }
  0x18   :  { %v94_v4 = vstv %s213_s2 }
  0x19   :  { %212 = vmatmul.msk.f32.vlgmr.msra.gmra.mxu0 %vm60_vm0, %v57_v2  ;;  %v97_v5 = vstv %s214_s27 }
  0x1a   :  { %v100_v6 = vstv %s215_s28 }
  0x1b   :  { %v103_v7 = vstv %s216_s29 }
  0x1c   :  { %v106_v8 = vstv %s217_s30 }
  0x96   :  { %v87_v9 = vpop.f32.mrf.mxu0 }
  0x97   :  { %v92_v10 = vadd.f32 %v91_v3, %v87_v9  ;;  %v95_v11 = vadd.f32 %v94_v4, %v87_v9  ;;  %v98_v12 = vadd.f32 %v97_v5, %v87_v9  ;;  %v101_v13 = vadd.f32 %v100_v6, %v87_v9 }
  0x98   :  { %v104_v14 = vadd.f32 %v103_v7, %v87_v9  ;;  %v107_v15 = vadd.f32 %v106_v8, %v87_v9 }
  0x99   :  { %v108_v16 = vmul.f32 %v92_v10, %v92_v10  ;;  %v109_v17 = vmul.f32 %v95_v11, %v95_v11  ;;  %v110_v18 = vmul.f32 %v98_v12, %v98_v12  ;;  %163 = vst.msk [vmem:[%s378_s3] sm:$0x8] %vm162_vm1, %v101_v13  ;;  %v112_v30 = vrot.slane %v95_v11, 1 }
  0x9a   :  { %181 = vst.msk [vmem:[%s378_s3 + $0x3] sm:$0x10] %vm180_vm2, %v104_v14  ;;  %v119_v31 = vrot.slane %v98_v12, 1  ;;  %v116_v32 = vrot.slane %v98_v12, 2  ;;  %v172_v44 = vrot.slane %v92_v10, 7 }
  0x9b   :  { %v122_v20 = vadd.f32 1.0, %v108_v16  ;;  %v124_v21 = vrot.slane %v109_v17, 1  ;;  %196 = vst.msk [vmem:[%s378_s3 + $0x6] sm:$0x20] %vm195_vm3, %v107_v15  ;;  %v128_v24 = vrot.slane %v110_v18, 2  ;;  %v146_v34 = vrot.slane %v110_v18, 1 }
  0x9c   :  { %v114_v38 = vmul.f32 %v112_v30, %v92_v10  ;;  %v121_v39 = vmul.f32 %v119_v31, %v95_v11  ;;  %v118_v40 = vmul.f32 %v116_v32, %v92_v10 }
  0x9d   :  { %v126_v23 = vadd.f32 %v124_v21, %v122_v20  ;;  %v148_v42 = vadd.f32 %v146_v34, %v109_v17  ;;  %v167_v53 = vadd.f32 %v128_v24, %v108_v16  ;;  %v191_v58 = vadd.f32 %v124_v21, %v108_v16 }
  0x9e   :  { %v174_v47 = vsub.f32 %v121_v39, %v172_v44  ;;  %v156_v50 = vsub.f32 %v114_v38, %v116_v32  ;;  %v159_v51 = vadd.f32 %v118_v40, %v112_v30  ;;  %v164_v52 = vadd.f32 %v116_v32, %v114_v38 }
  0x9f   :  { %v130_v25 = vadd.f32 %v128_v24, %v126_v23  ;;  %v150_v49 = vrot.slane %v148_v42, 1  ;;  %v185_v54 = vadd.f32 %v172_v44, %v121_v39  ;;  %v182_v63 = vsub.f32 %v118_v40, %v112_v30 }
  0xa0   :  { %v176_v61 = vrot.slane %v174_v47, 1 }
  0xa1   :  { %224 = vrcp.f32 %v130_v25  ;;  %v142_v35 = vand.u32 2147483648, %v130_v25  ;;  %v140_v37 = vand.u32 2147483647, %v130_v25  ;;  %vm136_vm7 = vweird.f32 %v130_v25 }
  0xa2   :  { %v187_v3 = vrot.slane %v185_v54, 1 }
  0xa3   :  { %v143_v43 = vor.u32 1.1754944e-38, %v142_v35  ;;  %vm141_vm9 = vcmp.eq.f32.partialorder %v140_v37, 8.507059e+37 }
  0xa7   :  { %v225_v28 = vpop.eup %224 }
  0xa8   :  { %v132_v29 = vmul.f32 %v225_v28, %v130_v25  ;;  %vm137_vm6 = vweird.f32 %v225_v28 }
  0xa9   :  { %vm138_vm8 = vmor %vm136_vm7, %vm137_vm6 }
  0xaa   :  { %v133_v33 = vsub.f32 1.0, %v132_v29 }
  0xac   :  { %v134_v36 = vmul.f32 %v225_v28, %v133_v33 }
  0xae   :  { %v135_v41 = vadd.f32 %v225_v28, %v134_v36 }
  0xb0   :  { %v139_v45 = vsel %vm138_vm8, %v225_v28, %v135_v41 }
  0xb1   :  { %v144_v46 = vsel %vm141_vm9, %v143_v43, %v139_v45 }
  0xb2   :  { %v145_v48 = vmul.f32 2.0, %v144_v46 }
  0xb4   :  { %v152_v55 = vmul.f32 %v150_v49, %v145_v48  ;;  %v157_v56 = vmul.f32 %v156_v50, %v145_v48  ;;  %v160_v57 = vmul.f32 %v159_v51, %v145_v48  ;;  %v165_v59 = vmul.f32 %v164_v52, %v145_v48 }
  0xb5   :  { %v168_v60 = vmul.f32 %v167_v53, %v145_v48  ;;  %v192_v0 = vmul.f32 %v191_v58, %v145_v48  ;;  %v178_v2 = vmul.f32 %v176_v61, %v145_v48  ;;  %v183_v4 = vmul.f32 %v182_v63, %v145_v48 }
  0xb6   :  { %v153_v62 = vsub.f32 1.0, %v152_v55  ;;  %158 = vst.msk [vmem:[%s378_s3 + $0x1] sm:$0x1] %vm154_vm10, %v157_v56  ;;  %v189_v5 = vmul.f32 %v187_v3, %v145_v48 }
  0xb7   :  { %161 = vst.msk [vmem:[%s378_s3 + $0x2] sm:$0x1] %vm154_vm10, %v160_v57  ;;  %v169_v1 = vsub.f32 1.0, %v168_v60  ;;  %v193_v6 = vsub.f32 1.0, %v192_v0 }
  0xb8   :  { %155 = vst.msk [vmem:[%s378_s3] sm:$0x1] %vm154_vm10, %v153_v62 }
  0xb9   :  { %166 = vst.msk [vmem:[%s378_s3 + $0x4] sm:$0x1] %vm154_vm10, %v165_v59 }
  0xba   :  { %170 = vst.msk [vmem:[%s378_s3 + $0x5] sm:$0x1] %vm154_vm10, %v169_v1 }
  0xbb   :  { %179 = vst.msk [vmem:[%s378_s3 + $0x6] sm:$0x1] %vm154_vm10, %v178_v2 }
  0xbc   :  { %184 = vst.msk [vmem:[%s378_s3 + $0x8] sm:$0x1] %vm154_vm10, %v183_v4 }
  0xbd   :  { %190 = vst.msk [vmem:[%s378_s3 + $0x9] sm:$0x1] %vm154_vm10, %v189_v5 }
  0xbe   :  { %194 = vst.msk [vmem:[%s378_s3 + $0xa] sm:$0x1] %vm154_vm10, %v193_v6 }
  0xbf   :  { %207 = vsyncpa [#allocation3], 1 }
  0xc0   :  { %208 = vsyncpa [#allocation6], 1 }
  0xc1   :  { %209 = vsyncpa [#allocation4], 1 }

</bundles_post_ra>
